<compile_context>
chip_gen: v7x
topology: tpu7x:2x2x1
jax: 0.10.0
libtpu: 0.0.40
codegen_flags: <defaults>
</compile_context>

<pallas_src>
import functools
import math

import jax
import jax.numpy as jnp
from jax.experimental import pallas as pl
from jax.experimental.pallas import tpu as pltpu

_BN_EPS = 1e-5
# Conservative per-pass VMEM budget (bytes) so double-buffered tiles fit the
# default scoped limit even on v5e (16 MiB default scoped VMEM).
_VMEM_BUDGET = 10 * 1024 * 1024


def _round_up(x, m):
    return ((x + m - 1) // m) * m


def _pick_k_tile(in_dim, tm, hidden):
    """Largest K tile that divides in_dim and fits the VMEM budget (double-buffered)."""
    for t in (1024, 512, 256, 128):
        if in_dim % t != 0:
            continue
        # 2x (x tile f32) + 2x (W1 tile bf16) + 2x (h tile bf16) + acc f32
        need = (2 * tm * t * 4 + 2 * t * hidden * 2
                + 2 * tm * hidden * 2 + tm * hidden * 4)
        if need <= _VMEM_BUDGET:
            return t
    return in_dim  # small / ragged K: single block equal to the full dim (legal)


def _pass1_kernel(x_ref, w1_ref, b1_ref, h_ref, sum_ref, sq_ref, acc_ref,
                  *, tm, batch, padded):
    """Tiled x @ W1 + b1 (bf16 MXU, f32 accumulation) + per-tile BN statistics."""
    k = pl.program_id(1)

    @pl.when(k == 0)
    def _():
        acc_ref[...] = jnp.zeros_like(acc_ref)

    acc_ref[...] += jnp.dot(
        x_ref[...].astype(jnp.bfloat16),
        w1_ref[...],
        preferred_element_type=jnp.float32,
    )

    @pl.when(k == pl.num_programs(1) - 1)
    def _():
        h = acc_ref[...] + b1_ref[...]
        h_ref[...] = h.astype(h_ref.dtype)
        if padded:  # static: exclude zero-padded batch rows from the statistics
            rows = (jax.lax.broadcasted_iota(jnp.int32, h.shape, 0)
                    + pl.program_id(0) * tm)
            h = jnp.where(rows < batch, h, 0.0)
        s = jnp.sum(h, axis=0, keepdims=True)
        ss = jnp.sum(h * h, axis=0, keepdims=True)
        sum_ref[...] = s.reshape(sum_ref.shape)
        sq_ref[...] = ss.reshape(sq_ref.shape)


def _pass2_kernel(h_ref, scale_ref, shift_ref, w2_ref, b2_ref, o_ref):
    """Fused BN (single FMA) + ReLU + h @ W2 + b2 on one batch tile."""
    h = h_ref[...].astype(jnp.float32)
    h = jnp.maximum(h * scale_ref[...] + shift_ref[...], 0.0)
    y = jnp.dot(h.astype(jnp.bfloat16), w2_ref[...],
                preferred_element_type=jnp.float32)
    o_ref[...] = (y + b2_ref[...]).astype(o_ref.dtype)


def prediction_mlp_forward(x, params):
    """x: (B, in_dim) float32. params: dict of W1, b1, gamma, beta, W2, b2."""
    B, in_dim = x.shape
    hidden = params["W1"].shape[1]
    out_dim = params["W2"].shape[1]

    # Batch tile: MXU/vreg friendly (256 for big batches, 8-aligned otherwise).
    tm = 256 if B >= 256 else _round_up(B, 8)
    b_pad = _round_up(B, tm)
    n_bt = b_pad // tm
    tk = _pick_k_tile(in_dim, tm, hidden)
    n_k = in_dim // tk
    padded = b_pad != B

    xp = x if not padded else jnp.pad(x, ((0, b_pad - B), (0, 0)))

    # Weights streamed as bf16 (halves weight DMA; MXU is bf16-native).
    w1 = params["W1"].astype(jnp.bfloat16)
    w2 = params["W2"].astype(jnp.bfloat16)
    b1 = params["b1"].reshape(1, hidden).astype(jnp.float32)
    b2 = params["b2"].reshape(1, out_dim).astype(jnp.float32)

    kernel1 = functools.partial(_pass1_kernel, tm=tm, batch=B, padded=padded)

    h, sums, sqs = pl.pallas_call(
        kernel1,
        out_shape=(
            jax.ShapeDtypeStruct((b_pad, hidden), jnp.bfloat16),
            jax.ShapeDtypeStruct((n_bt, 1, hidden), jnp.float32),
            jax.ShapeDtypeStruct((n_bt, 1, hidden), jnp.float32),
        ),
        grid_spec=pltpu.PrefetchScalarGridSpec(
            num_scalar_prefetch=0,
            grid=(n_bt, n_k),
            in_specs=[
                pl.BlockSpec((tm, tk), lambda i, k: (i, k)),
                pl.BlockSpec((tk, hidden), lambda i, k: (k, 0)),
                pl.BlockSpec((1, hidden), lambda i, k: (0, 0)),
            ],
            out_specs=[
                pl.BlockSpec((tm, hidden), lambda i, k: (i, 0)),
                pl.BlockSpec((1, 1, hidden), lambda i, k: (i, 0, 0)),
                pl.BlockSpec((1, 1, hidden), lambda i, k: (i, 0, 0)),
            ],
            scratch_shapes=[pltpu.VMEM((tm, hidden), jnp.float32)],
        ),
        compiler_params=pltpu.CompilerParams(
            dimension_semantics=("parallel", "arbitrary")),
    )(xp, w1, b1)

    # Fold BatchNorm1d (training-mode batch stats, biased var) into scale/shift.
    total = jnp.sum(sums[:, 0, :], axis=0)
    total_sq = jnp.sum(sqs[:, 0, :], axis=0)
    mean = total / B
    var = jnp.maximum(total_sq / B - mean * mean, 0.0)
    inv = jax.lax.rsqrt(var + _BN_EPS)
    gamma = params["gamma"].astype(jnp.float32)
    beta = params["beta"].astype(jnp.float32)
    scale = (gamma * inv).reshape(1, hidden)
    shift = (beta - mean * gamma * inv).reshape(1, hidden)

    out = pl.pallas_call(
        _pass2_kernel,
        out_shape=jax.ShapeDtypeStruct((b_pad, out_dim), x.dtype),
        grid_spec=pltpu.PrefetchScalarGridSpec(
            num_scalar_prefetch=0,
            grid=(n_bt,),
            in_specs=[
                pl.BlockSpec((tm, hidden), lambda i: (i, 0)),
                pl.BlockSpec((1, hidden), lambda i: (0, 0)),
                pl.BlockSpec((1, hidden), lambda i: (0, 0)),
                pl.BlockSpec((hidden, out_dim), lambda i: (0, 0)),
                pl.BlockSpec((1, out_dim), lambda i: (0, 0)),
            ],
            out_specs=pl.BlockSpec((tm, out_dim), lambda i: (i, 0)),
        ),
        compiler_params=pltpu.CompilerParams(
            dimension_semantics=("parallel",)),
    )(h, scale, shift, w2, b2)

    return out if not padded else out[:B]


def init_params(key, in_dim, hidden_dim, out_dim):
    """Deterministic init mimicking PyTorch defaults (uniform +-1/sqrt(fan_in))."""
    k1, k2, k3, k4 = jax.random.split(key, 4)
    bnd1 = 1.0 / math.sqrt(in_dim)
    bnd2 = 1.0 / math.sqrt(hidden_dim)
    return {
        "W1": jax.random.uniform(k1, (in_dim, hidden_dim), jnp.float32, -bnd1, bnd1),
        "b1": jax.random.uniform(k2, (hidden_dim,), jnp.float32, -bnd1, bnd1),
        "gamma": jnp.ones((hidden_dim,), jnp.float32),
        "beta": jnp.zeros((hidden_dim,), jnp.float32),
        "W2": jax.random.uniform(k3, (hidden_dim, out_dim), jnp.float32, -bnd2, bnd2),
        "b2": jax.random.uniform(k4, (out_dim,), jnp.float32, -bnd2, bnd2),
    }


def reference_forward(x, params):
    """Pure-JAX f32 reference with identical semantics (sanity check)."""
    h = x @ params["W1"] + params["b1"]
    mean = jnp.mean(h, axis=0, keepdims=True)
    var = jnp.mean((h - mean) ** 2, axis=0, keepdims=True)
    h = (h - mean) / jnp.sqrt(var + _BN_EPS)
    h = h * params["gamma"] + params["beta"]
    h = jnp.maximum(h, 0.0)
    return h @ params["W2"] + params["b2"]


if __name__ == "__main__":
    key = jax.random.PRNGKey(0)
    kx, kp, kx2, kp2 = jax.random.split(key, 4)

    # Small shapes (single-tile path), consistent with the module's (B, in_dim) input.
    B, IN_DIM, HIDDEN_DIM, OUT_DIM = 8, 32, 16, 32
    x = jax.random.normal(kx, (B, IN_DIM), jnp.float32)
    params = init_params(kp, IN_DIM, HIDDEN_DIM, OUT_DIM)
    out = jax.block_until_ready(prediction_mlp_forward(x, params))
    ref = reference_forward(x, params)
    assert out.shape == (B, OUT_DIM)
    assert jnp.allclose(out, ref, atol=5e-2, rtol=5e-2), float(jnp.max(jnp.abs(out - ref)))

    # Moderate shapes exercising the tiled grid (2 batch tiles x multiple K tiles)
    # and the cross-tile BN statistics reduction. bf16 matmuls => loose tolerance.
    B2, IN2, HID2, OUT2 = 512, 1024, 128, 256
    x2 = jax.random.normal(kx2, (B2, IN2), jnp.float32)
    params2 = init_params(kp2, IN2, HID2, OUT2)
    out2 = jax.block_until_ready(prediction_mlp_forward(x2, params2))
    ref2 = reference_forward(x2, params2)
    assert out2.shape == (B2, OUT2)
    assert jnp.allclose(out2, ref2, atol=5e-2, rtol=5e-2), float(jnp.max(jnp.abs(out2 - ref2)))

    print("KERNEL_OK")
</pallas_src>

<mosaic_0001>
module attributes {stable_mosaic.version = 11 : i64} {
  func.func @_pass1_kernel(%arg0: i32, %arg1: i32, %arg2: memref<8x32xf32, #tpu.memory_space<vmem>>, %arg3: memref<32x16xbf16, #tpu.memory_space<vmem>>, %arg4: memref<1x16xf32, #tpu.memory_space<vmem>>, %arg5: memref<8x16xbf16, #tpu.memory_space<vmem>>, %arg6: memref<1x1x16xf32, #tpu.memory_space<vmem>>, %arg7: memref<1x1x16xf32, #tpu.memory_space<vmem>>, %arg8: memref<8x16xf32, #tpu.memory_space<vmem>>) attributes {dimension_semantics = [#tpu.dimension_semantics<parallel>, #tpu.dimension_semantics<arbitrary>], iteration_bounds = array<i64: 1, 1>, scalar_prefetch = 0 : i64, scratch_operands = 1 : i64, tpu.core_type = #tpu.core_type<tc>, window_params = [{transform_indices = @transform_0, window_bounds = array<i64: 8, 32>}, {transform_indices = @transform_1, window_bounds = array<i64: 32, 16>}, {pipeline_mode = #tpu.pipeline_mode<synchronous>, transform_indices = @transform_2, window_bounds = array<i64: 1, 16>}, {transform_indices = @transform_3, window_bounds = array<i64: 8, 16>}, {transform_indices = @transform_4, window_bounds = array<i64: 1, 1, 16>}, {transform_indices = @transform_5, window_bounds = array<i64: 1, 1, 16>}]} {
    %c0_i32 = arith.constant 0 : i32
    %0 = arith.cmpi eq, %arg1, %c0_i32 : i32
    %1 = arith.extui %0 : i1 to i32
    %c0_i32_0 = arith.constant 0 : i32
    %2 = arith.cmpi ne, %1, %c0_i32_0 : i32
    scf.if %2 {
      %cst_10 = arith.constant 0.000000e+00 : f32
      %13 = vector.broadcast %cst_10 : f32 to vector<8x16xf32>
      %c0_11 = arith.constant 0 : index
      %c0_12 = arith.constant 0 : index
      %14 = vector.load %arg8[%c0_11, %c0_12] : memref<8x16xf32, #tpu.memory_space<vmem>>, vector<8x16xf32>
      tpu.vector_store %arg8[%c0_11, %c0_12], %13 {strides = array<i32>} : memref<8x16xf32, #tpu.memory_space<vmem>>, vector<8x16xf32>,
    } else {
    }
    %c0 = arith.constant 0 : index
    %c0_1 = arith.constant 0 : index
    %3 = vector.load %arg8[%c0, %c0_1] : memref<8x16xf32, #tpu.memory_space<vmem>>, vector<8x16xf32>
    %c0_2 = arith.constant 0 : index
    %c0_3 = arith.constant 0 : index
    %4 = vector.load %arg2[%c0_2, %c0_3] : memref<8x32xf32, #tpu.memory_space<vmem>>, vector<8x32xf32>
    %5 = arith.truncf %4 : vector<8x32xf32> to vector<8x32xbf16>
    %c0_4 = arith.constant 0 : index
    %c0_5 = arith.constant 0 : index
    %6 = vector.load %arg3[%c0_4, %c0_5] : memref<32x16xbf16, #tpu.memory_space<vmem>>, vector<32x16xbf16>
    %cst = arith.constant dense<0.000000e+00> : vector<8x16xf32>
    %7 = tpu.matmul %5, %6, %cst {dimension_numbers = #tpu.dot_dimension_numbers<[1], [0], [0], [1], [0, 0, 1, 1], [], []>} : vector<8x32xbf16>, vector<32x16xbf16>, vector<8x16xf32> -> vector<8x16xf32>
    %8 = arith.addf %3, %7 : vector<8x16xf32>
    %c0_6 = arith.constant 0 : index
    %c0_7 = arith.constant 0 : index
    %9 = vector.load %arg8[%c0_6, %c0_7] : memref<8x16xf32, #tpu.memory_space<vmem>>, vector<8x16xf32>
    tpu.vector_store %arg8[%c0_6, %c0_7], %8 {strides = array<i32>} : memref<8x16xf32, #tpu.memory_space<vmem>>, vector<8x16xf32>,
    %c0_i32_8 = arith.constant 0 : i32
    %10 = arith.cmpi eq, %arg1, %c0_i32_8 : i32
    %11 = arith.extui %10 : i1 to i32
    %c0_i32_9 = arith.constant 0 : i32
    %12 = arith.cmpi ne, %11, %c0_i32_9 : i32
    scf.if %12 {
      %c0_10 = arith.constant 0 : index
      %c0_11 = arith.constant 0 : index
      %13 = vector.load %arg8[%c0_10, %c0_11] : memref<8x16xf32, #tpu.memory_space<vmem>>, vector<8x16xf32>
      %c0_12 = arith.constant 0 : index
      %c0_13 = arith.constant 0 : index
      %14 = vector.load %arg4[%c0_12, %c0_13] : memref<1x16xf32, #tpu.memory_space<vmem>>, vector<1x16xf32>
      %15 = vector.broadcast %14 : vector<1x16xf32> to vector<8x16xf32>
      %16 = arith.addf %13, %15 : vector<8x16xf32>
      %17 = arith.truncf %16 : vector<8x16xf32> to vector<8x16xbf16>
      %c0_14 = arith.constant 0 : index
      %c0_15 = arith.constant 0 : index
      %18 = vector.load %arg5[%c0_14, %c0_15] : memref<8x16xbf16, #tpu.memory_space<vmem>>, vector<8x16xbf16>
      tpu.vector_store %arg5[%c0_14, %c0_15], %17 {strides = array<i32>} : memref<8x16xbf16, #tpu.memory_space<vmem>>, vector<8x16xbf16>,
      %cst_16 = arith.constant dense<0.000000e+00> : vector<16xf32>
      %19 = vector.multi_reduction <add>, %16, %cst_16 [0] : vector<8x16xf32> to vector<16xf32>
      %20 = vector.shape_cast %19 : vector<16xf32> to vector<1x16xf32>
      %21 = arith.mulf %16, %16 : vector<8x16xf32>
      %cst_17 = arith.constant dense<0.000000e+00> : vector<16xf32>
      %22 = vector.multi_reduction <add>, %21, %cst_17 [0] : vector<8x16xf32> to vector<16xf32>
      %23 = vector.shape_cast %22 : vector<16xf32> to vector<1x16xf32>
      %24 = vector.shape_cast %20 : vector<1x16xf32> to vector<1x1x16xf32>
      %c0_18 = arith.constant 0 : index
      %c0_19 = arith.constant 0 : index
      %c0_20 = arith.constant 0 : index
      %25 = vector.load %arg6[%c0_18, %c0_19, %c0_20] : memref<1x1x16xf32, #tpu.memory_space<vmem>>, vector<1x1x16xf32>
      tpu.vector_store %arg6[%c0_18, %c0_19, %c0_20], %24 {strides = array<i32>} : memref<1x1x16xf32, #tpu.memory_space<vmem>>, vector<1x1x16xf32>,
      %26 = vector.shape_cast %23 : vector<1x16xf32> to vector<1x1x16xf32>
      %c0_21 = arith.constant 0 : index
      %c0_22 = arith.constant 0 : index
      %c0_23 = arith.constant 0 : index
      %27 = vector.load %arg7[%c0_21, %c0_22, %c0_23] : memref<1x1x16xf32, #tpu.memory_space<vmem>>, vector<1x1x16xf32>
      tpu.vector_store %arg7[%c0_21, %c0_22, %c0_23], %26 {strides = array<i32>} : memref<1x1x16xf32, #tpu.memory_space<vmem>>, vector<1x1x16xf32>,
    } else {
    }
    return
  }
  func.func @transform_0(%arg0: i32, %arg1: i32) -> (i32, i32) {
    %c0_i32 = arith.constant 0 : i32
    return %arg0, %arg1 : i32, i32
  }
  func.func @transform_1(%arg0: i32, %arg1: i32) -> (i32, i32) {
    %c0_i32 = arith.constant 0 : i32
    %c0_i32_0 = arith.constant 0 : i32
    return %arg1, %c0_i32 : i32, i32
  }
  func.func @transform_2(%arg0: i32, %arg1: i32) -> (i32, i32) {
    %c0_i32 = arith.constant 0 : i32
    %c0_i32_0 = arith.constant 0 : i32
    %c0_i32_1 = arith.constant 0 : i32
    return %c0_i32, %c0_i32_0 : i32, i32
  }
  func.func @transform_3(%arg0: i32, %arg1: i32) -> (i32, i32) {
    %c0_i32 = arith.constant 0 : i32
    %c0_i32_0 = arith.constant 0 : i32
    return %arg0, %c0_i32 : i32, i32
  }
  func.func @transform_4(%arg0: i32, %arg1: i32) -> (i32, i32, i32) {
    %c0_i32 = arith.constant 0 : i32
    %c0_i32_0 = arith.constant 0 : i32
    %c0_i32_1 = arith.constant 0 : i32
    return %arg0, %c0_i32, %c0_i32_0 : i32, i32, i32
  }
  func.func @transform_5(%arg0: i32, %arg1: i32) -> (i32, i32, i32) {
    %c0_i32 = arith.constant 0 : i32
    %c0_i32_0 = arith.constant 0 : i32
    %c0_i32_1 = arith.constant 0 : i32
    return %arg0, %c0_i32, %c0_i32_0 : i32, i32, i32
  }
}

</mosaic_0001>

<bundles_post_ra>
// kernel: tpu_custom_call.1
= control target key start
LH: loop header
LB: loop body
LE: loop exit
PB: predicated region body
PF: predicated region fallthrough
CT: control target
= control target key end

     0   :  { %11 = vsyncpa [#allocation4], 0  ;;  %vm24_vm0 = vcmask 130048   ;;  %v258_v0 = vmov 0.0   ;;  %vm259_vm1 = vmmov 0   ;;  %s355_s0 = inlined_call_operand.vmem [shape: f32[8,32], index: 0, kind: input, shape index: {}]   ;;  %s356_s1 = inlined_call_operand.vmem [shape: bf16[32,16], index: 1, kind: input, shape index: {}]   ;;  %s357_s2 = inlined_call_operand.vmem [shape: f32[1,16], index: 2, kind: input, shape index: {}]   ;;  %s358_s3 = inlined_call_operand.hbm [shape: bf16[8,16], index: 3, kind: output, shape index: {0}]   ;;  %s359_s4 = inlined_call_operand.hbm [shape: f32[1,1,16], index: 4, kind: output, shape index: {1}]   ;;  %s360_s5 = inlined_call_operand.hbm [shape: f32[1,1,16], index: 5, kind: output, shape index: {2}]  }
   0x1   :  { %25 = vst.msk [vmem:[#allocation2] sm:$0xff] %vm24_vm0, %v258_v0  ;;  %173 = vmatprep.subr.bf16.mxu0 %v258_v0  ;;  %v186_v1 = vld [vmem:[%s356_s1] sm:$0xff]   ;;  %177 = vmatprep.mubr.msk.bf16.mxu0 %vm259_vm1, %v258_v0 }
   0x2   :  { %12 = vsyncpa [#allocation6], 0  ;;  %174 = vmatpush3.bf16.msra.mxu0 %v186_v1  ;;  %v187_v2 = vld [vmem:[%s356_s1 + $0x8] sm:$0xff]   ;;  %v27_v3 = vld [vmem:[%s355_s0] sm:$0xff]  ;;  %vm45_vm2 = vcmask 261120   ;;  %s260_s1 = smov [#allocation3]  }
   0x3   :  { %175 = vmatprep.subr.bf16.mxu0 %v258_v0  ;;  %v28_v4 = vpack.c.bf16 %v27_v3, %v27_v3  ;;  %v169_v11 = vld [vmem:[%s357_s2] ss:$0 sm:$0xff]  ;;  %s131_s0 = sshll.u32 %s260_s1, 4  ;;  %vm105_vm3 = vcmask 125952   ;;  %s132_s0 = int_to_ptr.vmem [resolvable:$true] %s131_s0 }
   0x4   :  { %s188_s26 = scalar_lea.vmem %s132_s0, 64  ;;  %p193_p1 = scmp.lt.s32.totalorder %s132_s0, %s132_s0 }
   0x5   :  { %p189_p0 = scmp.ne.s32.totalorder %s132_s0, %s188_s26  ;;  %p194_p2 = scmp.lt.s32.totalorder %s188_s26, %s188_s26 }
   0x6   :  { %176 = vmatpush3.bf16.msra.mxu0 %v187_v2 }
   0x7   :  { %p195_p3 = por %p194_p2, %p193_p1 }
   0x8   :  { %v26_v5 = vld [vmem:[#allocation2] sm:$0xff] }
   0x9   :  { %178 = vmatmul.mubr.msk.bf16.vlgmr.msra.gmra.mrb[0].mxu0 %vm45_vm2, %v28_v4  ;;  %p196_p4 = pnand %p195_p3, %p189_p0 }
  0xdc   :  { %v83_v6 = vpop.f32.mrb[0].mxu0 }
  0xdd   :  { %v89_v7 = vadd.f32 %v83_v6, %v26_v5  ;;  %v179_v8 = vpop.f32.mrb[1].mxu0 }
  0xde   :  { %v86_v9 = vpop.f32.mrb[2].mxu0 }
  0xdf   :  { %91 = vst.msk [vmem:[#allocation2] sm:$0xff] %vm24_vm0, %v89_v7  ;;  %v180_v10 = vpop.f32.mrb[3].mxu0 }
  0xe6   :  { %v95_v12 = vld [vmem:[#allocation2] sm:$0xff] }
  0xe7   :  { %v103_v13 = vadd.f32 %v169_v11, %v95_v12 }
  0xe9   :  { %v107_v14 = vsel %vm24_vm0, %v103_v13, 0.0  ;;  %v104_v15 = vpack.c.bf16 %v103_v13, %v103_v13  ;;  %v114_v16 = vmul.f32 %v103_v13, %v103_v13 }
  0xea   :  { %v108_v17 = vrot.slane %v107_v14, 4 }
  0xeb   :  { %106 = vst.msk [vmem:[#allocation3] sm:$0xf] %vm105_vm3, %v104_v15  ;;  %v115_v18 = vsel %vm24_vm0, %v114_v16, 0.0 }
  0xec   :  { %v109_v19 = vadd.f32 %v108_v17, %v107_v14 }
  0xed   :  { %199 = shalt.err (!%p196_p4)
}
  0xee   :  { %s200_s28 = scalar_lea.hbm %s358_s3, 64 }
  0xef   :  { %p201_p5 = scmp.ne.s32.totalorder %s358_s3, %s200_s28  ;;  %p204_p6 = scmp.lt.u32.totalorder %s200_s28, %s358_s3 }
  0xf1   :  { %p206_p7 = pnand %p204_p6, %p201_p5 }
  0xf3   :  { %209 = shalt.err (!%p206_p7)
}
  0xf4   :  { %134 = dma.vmem_to_hbm [thread:$0]  %s132_s0, 64, %s358_s3, [#allocation4]   ;;  %v116_v20 = vrot.slane %v115_v18, 4  ;;  %v110_v21 = vrot.slane %v109_v19, 2  ;;  %vm122_vm4 = vcmask 122880  }
  0xf5   :  { %s261_s10 = smov [#allocation5]   ;;  %s262_s12 = smov [#allocation7]  }
  0xf6   :  { %v117_v22 = vadd.f32 %v116_v20, %v115_v18  ;;  %v111_v23 = vadd.f32 %v110_v21, %v109_v19  ;;  %s141_s11 = sshll.u32 %s261_s10, 4  ;;  %s151_s13 = sshll.u32 %s262_s12, 4  ;;  %s142_s11 = int_to_ptr.vmem [resolvable:$true] %s141_s11  ;;  %s322_s13 = int_to_ptr.vmem [resolvable:$true] %s151_s13 }
  0xf7   :  { %s210_s3 = scalar_lea.vmem %s142_s11, 16  ;;  %s214_s14 = scalar_lea.vmem %s142_s11, 32 }
  0xf8   :  { %v118_v24 = vrot.slane %v117_v22, 2  ;;  %v112_v25 = vrot.slane %v111_v23, 1  ;;  %p211_p8 = scmp.ne.s32.totalorder %s142_s11, %s210_s3  ;;  %p215_p9 = scmp.lt.s32.totalorder %s142_s11, %s142_s11 }
  0xf9   :  { %p216_p10 = scmp.lt.s32.totalorder %s214_s14, %s210_s3 }
  0xfa   :  { %v119_v26 = vadd.f32 %v118_v24, %v117_v22  ;;  %v113_v27 = vadd.f32 %v112_v25, %v111_v23 }
  0xfb   :  { %p217_p11 = por %p216_p10, %p215_p9 }
  0xfc   :  { %v120_v28 = vrot.slane %v119_v26, 1  ;;  %123 = vst.msk [vmem:[#allocation5] sm:$0x1] %vm122_vm4, %v113_v27 }
  0xfd   :  { %p218_p12 = pnand %p217_p11, %p211_p8 }
  0xfe   :  { %v121_v29 = vadd.f32 %v120_v28, %v119_v26 }
  0xff   :  { %221 = shalt.err (!%p218_p12)
}
 0x100   :  { %s222_s17 = scalar_lea.hbm %s359_s4, 16 }
 0x101   :  { %p223_p13 = scmp.ne.s32.totalorder %s359_s4, %s222_s17  ;;  %p226_p0 = scmp.lt.u32.totalorder %s222_s17, %s359_s4 }
 0x103   :  { %p228_p1 = pnand %p226_p0, %p223_p13 }
 0x105   :  { %231 = shalt.err (!%p228_p1)
}
 0x106   :  { %144 = dma.vmem_to_hbm [thread:$0]  %s142_s11, 16, %s359_s4, [#allocation6]   ;;  %124 = vst.msk [vmem:[#allocation7] sm:$0x1] %vm122_vm4, %v121_v29 }
 0x107   :  { %s232_s24 = scalar_lea.vmem %s322_s13, 16  ;;  %s236_s25 = scalar_lea.vmem %s322_s13, 32 }
 0x108   :  { %p233_p2 = scmp.ne.s32.totalorder %s322_s13, %s232_s24  ;;  %p237_p3 = scmp.lt.s32.totalorder %s322_s13, %s322_s13 }
 0x109   :  { %p238_p4 = scmp.lt.s32.totalorder %s236_s25, %s232_s24 }
 0x10b   :  { %p239_p5 = por %p238_p4, %p237_p3 }
 0x10d   :  { %p240_p6 = pnand %p239_p5, %p233_p2 }
 0x10f   :  { %243 = shalt.err (!%p240_p6)
}
 0x110   :  { %s244_s26 = scalar_lea.hbm %s360_s5, 16 }
 0x111   :  { %p245_p7 = scmp.ne.s32.totalorder %s360_s5, %s244_s26  ;;  %p248_p8 = scmp.lt.u32.totalorder %s244_s26, %s360_s5 }
 0x113   :  { %p250_p9 = pnand %p248_p8, %p245_p7 }
 0x115   :  { %253 = shalt.err (!%p250_p9)
}
 0x116   :  { %154 = dma.vmem_to_hbm [thread:$0]  %s322_s13, 16, %s360_s5, [#allocation6]  }
 0x117   :  { %254 = dma.done.wait [#allocation4], 64  }
 0x118   :  { %255 = vsyncadd [#allocation4], 4294967232 }
 0x119   :  { %256 = dma.done.wait [#allocation6], 32  }
 0x11a   :  { %257 = vsyncadd [#allocation6], 4294967264 }
 0x11b   :  { %164 = vsyncpa [#allocation4], 1 }
 0x11c   :  { %165 = vsyncpa [#allocation6], 1 }

</bundles_post_ra>
